<compile_context>
chip_gen: v6e
topology: v6e:2x2x1
jax: 0.10.0
libtpu: 0.0.40
codegen_flags: <defaults>
</compile_context>

<pallas_src>
import functools

import jax
import jax.numpy as jnp
import numpy as np
from jax import lax
from jax.experimental import pallas as pl
from jax.experimental.pallas import tpu as pltpu


def _invnet_kernel(x_ref, em_ref, tgt_ref, loss_ref,
                   xs_sc, m_sc, l_sc, t_sc, topv_sc, *,
                   inv_beta, k, use_smooth, num_classes, c_tile,
                   persist_xs, mask_cols):
    kc = pl.program_id(0)          # class-tile axis (outer, reduction)
    n_kc = pl.num_programs(0)
    b = pl.program_id(1)           # batch-tile axis (inner)

    @pl.when(kc == 0)
    def _init():
        if persist_xs:
            # x is resident (single batch tile): fold 1/beta in exactly once.
            xs_sc[...] = x_ref[...] * jnp.asarray(inv_beta, x_ref.dtype)
        m_sc[b] = jnp.full(m_sc.shape[1:], -jnp.inf, jnp.float32)
        l_sc[b] = jnp.zeros(l_sc.shape[1:], jnp.float32)
        t_sc[b] = jnp.zeros(t_sc.shape[1:], jnp.float32)
        if use_smooth:
            topv_sc[b] = jnp.full(topv_sc.shape[1:], -jnp.inf, jnp.float32)

    if persist_xs:
        xs = xs_sc[...]
    else:
        xs = x_ref[...] * jnp.asarray(inv_beta, x_ref.dtype)

    # ExemplarMemoryFunction.forward: inputs.mm(em.t()); then /= beta (folded
    # into xs).  em arrives as (F, C_TILE) so the MXU consumes it directly.
    logits = jnp.dot(xs, em_ref[...],
                     preferred_element_type=jnp.float32)          # (bt, ct) f32

    bt, ct = logits.shape
    col = lax.broadcasted_iota(jnp.int32, (bt, ct), 1)            # local col idx
    tgt = tgt_ref[...]                                            # (bt, 1) int32
    is_tgt = col == (tgt - kc * c_tile)
    if mask_cols:  # static: only when C was padded up to a multiple of c_tile
        logits = jnp.where(col < (num_classes - kc * c_tile), logits, -jnp.inf)

    # target logit (the target column lives in exactly one class tile)
    t_sc[b] = t_sc[b] + jnp.sum(jnp.where(is_tgt, logits, 0.0),
                                axis=-1, keepdims=True)

    # online softmax denominator (running max m, running sum-exp l)
    m_prev = m_sc[b]
    m_tile = jnp.max(logits, axis=-1, keepdims=True)
    m_new = jnp.maximum(m_prev, m_tile)
    l_sc[b] = (l_sc[b] * jnp.exp(m_prev - m_new)
               + jnp.sum(jnp.exp(logits - m_new), axis=-1, keepdims=True))
    m_sc[b] = m_new

    if use_smooth:
        # Merge this tile into the running top-k buffer (sorted descending,
        # lanes >= k hold -inf).  Slimmed merge: one cross-lane max + one
        # evict-by-value select per k-iteration; no flag/index machinery.
        # (Exact ties are evicted together — same ambiguity the reference's
        #  argsort tie-break already has for equal logits.)
        buf_v = topv_sc[b]                                        # (bt, 128)
        work = jnp.concatenate([buf_v, logits], axis=-1)          # (bt, 128+ct)
        vals = []
        for i in range(k):
            if i == 0:
                # reuse the softmax tile max: pool max = max(buffer head, m_tile)
                v = jnp.maximum(buf_v[:, 0:1], m_tile)
            else:
                v = jnp.max(work, axis=-1, keepdims=True)
            work = jnp.where(work == v, -jnp.inf, work)
            vals.append(v)
        pad = buf_v.shape[-1] - k
        if pad:
            vals.append(jnp.full((bt, pad), -jnp.inf, jnp.float32))
        topv_sc[b] = jnp.concatenate(vals, axis=-1)

    @pl.when(kc == n_kc - 1)
    def _finalize():
        lse = m_sc[b] + jnp.log(l_sc[b])                          # (bt, 1)
        t_logit = t_sc[b]
        t_logsm = t_logit - lse
        if use_smooth:
            topv = topv_sc[b]
            lane = lax.broadcasted_iota(jnp.int32, topv.shape, 1)
            s_topk = jnp.sum(jnp.where(lane < k, topv, 0.0),
                             axis=-1, keepdims=True)
            # target is in the top-k iff its logit >= the k-th largest logit
            in_topk = (t_logit >= topv[:, k - 1:k]).astype(jnp.float32)
            # -( logsm_t + (1/k) * sum_{j in topk, j != t} logsm_j )
            smooth = (s_topk - k * lse) - in_topk * t_logsm
            per_row = -(t_logsm + smooth * (1.0 / k))
        else:
            # F.cross_entropy == NLL of log_softmax at the target index
            per_row = -t_logsm
        loss_ref[b] = per_row


def _vmem_capacity_bytes():
    try:
        return int(pltpu.get_tpu_info().vmem_capacity_bytes)
    except Exception:
        return 64 * 1024 * 1024      # conservative (v7x-sized) fallback


def invnet_forward(inputs, em, targets, *, beta=0.05, knn=6, alpha=0.01,
                   epoch=6, c_tile=None, em_dtype=None, em_is_fc=False,
                   b_tile_max=1024):
    """Pallas implementation of InvNet.forward (returns the scalar loss).

    `em` may be given in the PyTorch (num_classes, num_features) layout, or —
    preferably — pre-transposed as (num_features, num_classes) with
    `em_is_fc=True` (and ideally already bf16), so no per-call HBM transpose /
    cast of the exemplar memory is needed.
    """
    del alpha  # alpha*epoch only affects the exemplar-memory *update* (backward)

    B, F = inputs.shape
    if em_is_fc:
        em_t = em
        F2, C = em.shape
    else:
        # One-time transpose (production code should store em as (F, C)).
        C, F2 = em.shape
        em_t = em.T
    assert F == F2, "feature dims of inputs and em must match"
    if em_dtype is not None:
        em_t = em_t.astype(em_dtype)

    use_smooth = (knn > 0) and (epoch is not None) and (epoch > 4)
    k = int(min(knn, C, 128)) if use_smooth else 1   # guard knn > C

    # ---- batch tiling: keep the whole batch resident whenever possible so em
    # is streamed from HBM exactly once; only tile for very large batches.
    if B <= b_tile_max:
        b_tile, n_b, B_pad = B, 1, B
    else:
        assert b_tile_max % 8 == 0
        b_tile = int(b_tile_max)
        B_pad = int(pl.cdiv(B, b_tile)) * b_tile
        n_b = B_pad // b_tile
    persist_xs = (n_b == 1)

    x_item = jnp.dtype(inputs.dtype).itemsize
    em_item = jnp.dtype(em_t.dtype).itemsize

    # ---- class tile auto-sizing: generation-aware (bigger tiles / VMEM budget
    # on the 128 MiB parts v5e/v6e, tighter on v7x's 64 MiB physical VMEM).
    vmem_cap = _vmem_capacity_bytes()
    if vmem_cap >= 100 * 1024 * 1024:        # v5e / v6e (128 MiB physical)
        vmem_limit = 96 * 1024 * 1024
        tile_budget = 16 * 1024 * 1024
    else:                                     # v7x (64 MiB) or unknown
        vmem_limit = 48 * 1024 * 1024
        tile_budget = 8 * 1024 * 1024
    resident = (3 * b_tile * F * x_item           # x (2 pipeline bufs) + xs scratch
                + 5 * n_b * b_tile * 128 * 4      # m/l/t/topv/out (lane padded)
                + (2 << 20))                      # headroom
    em_budget = max(1 << 20, min(tile_budget, (vmem_limit - resident) // 2))
    if c_tile is None:
        ct = max(128, (em_budget // max(1, F * em_item)) // 128 * 128)
        c_tile = int(min(ct, int(pl.cdiv(C, 128)) * 128))
    c_tile = int(c_tile)
    assert c_tile % 128 == 0 or c_tile == C

    c_pad = int(pl.cdiv(C, c_tile)) * c_tile
    if c_pad != C:
        # TODO(synk): store em pre-padded to a multiple of c_tile to avoid this.
        em_t = jnp.pad(em_t, ((0, 0), (0, c_pad - C)))
    n_c = c_pad // c_tile

    x = inputs
    tgt2d = targets.astype(jnp.int32).reshape(B, 1)
    if B_pad != B:
        x = jnp.pad(x, ((0, B_pad - B), (0, 0)))
        tgt2d = jnp.pad(tgt2d, ((0, B_pad - B), (0, 0)))

    kernel = functools.partial(
        _invnet_kernel, inv_beta=1.0 / float(beta), k=k, use_smooth=use_smooth,
        num_classes=C, c_tile=c_tile, persist_xs=persist_xs,
        mask_cols=(c_pad != C))

    per_row = pl.pallas_call(
        kernel,
        out_shape=jax.ShapeDtypeStruct((n_b, b_tile, 1), jnp.float32),
        grid_spec=pltpu.PrefetchScalarGridSpec(
            num_scalar_prefetch=0,
            # class axis OUTER: em's block index depends only on it, so the em
            # tile stays resident across the inner batch axis and em is read
            # from HBM exactly once per call.
            grid=(n_c, n_b),
            in_specs=[
                pl.BlockSpec((b_tile, F), lambda kc, b: (b, 0)),   # x
                pl.BlockSpec((F, c_tile), lambda kc, b: (0, kc)),  # em streamed
                pl.BlockSpec((b_tile, 1), lambda kc, b: (b, 0)),   # targets
            ],
            out_specs=pl.BlockSpec((n_b, b_tile, 1),
                                   lambda kc, b: (0, 0, 0)),        # resident
            scratch_shapes=[
                pltpu.VMEM((b_tile, F), inputs.dtype),        # x * (1/beta)
                pltpu.VMEM((n_b, b_tile, 1), jnp.float32),    # running max m
                pltpu.VMEM((n_b, b_tile, 1), jnp.float32),    # running sum-exp l
                pltpu.VMEM((n_b, b_tile, 1), jnp.float32),    # target logit
                pltpu.VMEM((n_b, b_tile, 128), jnp.float32),  # top-k values
            ]),
        compiler_params=pltpu.CompilerParams(
            # TODO(synk): v7x megacore — shard the CLASS axis across the two
            # TensorCores (partial softmax/top-k merge) so em bytes stay 1x.
            dimension_semantics=("arbitrary", "arbitrary"),
            vmem_limit_bytes=int(vmem_limit)),
    )(x, em_t, tgt2d)

    return jnp.sum(per_row.reshape(-1)[:B]) / B


def _invnet_reference(inputs, em, targets, *, beta=0.05, knn=6, epoch=6):
    """Pure-JAX reference mirroring the PyTorch forward, for validation."""
    logits = (inputs.astype(jnp.float32) @ em.astype(jnp.float32).T) / beta
    B, C = logits.shape
    logsm = jax.nn.log_softmax(logits, axis=1)
    if knn > 0 and epoch > 4:
        idx_sorted = jnp.argsort(-logits, axis=1)[:, :knn]
        onehot = jnp.zeros((B, C), jnp.float32)
        rows = jnp.arange(B)[:, None]
        onehot = onehot.at[rows, idx_sorted].set(1.0 / knn)
        onehot = onehot.at[jnp.arange(B), targets].set(1.0)
        return jnp.mean(-jnp.sum(onehot * logsm, axis=1))
    return jnp.mean(-logsm[jnp.arange(B), targets])


if __name__ == "__main__":
    B, F, C = 8, 64, 512            # batch, num_features, num_classes (exemplars)
    beta, knn, alpha = 0.05, 6, 0.01

    key = jax.random.PRNGKey(0)
    k1, k2, k3, k4, k5 = jax.random.split(key, 5)
    inputs = jax.random.normal(k1, (B, F), dtype=jnp.float32)
    # nn.Parameter(torch.zeros(C, F)) in __init__; use deterministic normalized
    # random rows here so the top-k / softmax path is non-degenerate.
    em = jax.random.normal(k2, (C, F), dtype=jnp.float32)
    em = em / jnp.linalg.norm(em, axis=1, keepdims=True)
    targets = jax.random.randint(k3, (B,), 0, C, dtype=jnp.int32)

    # 1) smooth-hot branch (epoch > 4), f32, 4 streamed class tiles of 128
    loss = jax.block_until_ready(
        invnet_forward(inputs, em, targets, beta=beta, knn=knn, alpha=alpha,
                       epoch=6, c_tile=128))
    ref = _invnet_reference(inputs, em, targets, beta=beta, knn=knn, epoch=6)
    np.testing.assert_allclose(np.asarray(loss), np.asarray(ref),
                               rtol=1e-3, atol=1e-3)

    # 2) cross-entropy branch (epoch <= 4)
    loss_ce = jax.block_until_ready(
        invnet_forward(inputs, em, targets, beta=beta, knn=knn, alpha=alpha,
                       epoch=2, c_tile=128))
    ref_ce = _invnet_reference(inputs, em, targets, beta=beta, knn=knn, epoch=2)
    np.testing.assert_allclose(np.asarray(loss_ce), np.asarray(ref_ce),
                               rtol=1e-3, atol=1e-3)

    # 3) auto class-tile sizing (single resident em tile at this small C)
    loss_auto = jax.block_until_ready(
        invnet_forward(inputs, em, targets, beta=beta, knn=knn, alpha=alpha,
                       epoch=6))
    np.testing.assert_allclose(np.asarray(loss_auto), np.asarray(ref),
                               rtol=1e-3, atol=1e-3)

    # 4) production layout: em stored pre-transposed (F, C) -> no wrapper em.T
    em_fc = em.T
    loss_fc = jax.block_until_ready(
        invnet_forward(inputs, em_fc, targets, beta=beta, knn=knn, alpha=alpha,
                       epoch=6, c_tile=128, em_is_fc=True))
    np.testing.assert_allclose(np.asarray(loss_fc), np.asarray(ref),
                               rtol=1e-3, atol=1e-3)

    # 5) batch-tiled fallback (n_b > 1): em is still streamed exactly once
    B2 = 16
    inputs2 = jax.random.normal(k4, (B2, F), dtype=jnp.float32)
    targets2 = jax.random.randint(k5, (B2,), 0, C, dtype=jnp.int32)
    loss_bt = jax.block_until_ready(
        invnet_forward(inputs2, em, targets2, beta=beta, knn=knn, alpha=alpha,
                       epoch=6, c_tile=128, b_tile_max=8))
    ref_bt = _invnet_reference(inputs2, em, targets2, beta=beta, knn=knn, epoch=6)
    np.testing.assert_allclose(np.asarray(loss_bt), np.asarray(ref_bt),
                               rtol=1e-3, atol=1e-3)

    # 6) bf16 exemplar-memory streaming (recommended storage format); x and all
    #    softmax/top-k math stay f32 inside the kernel.
    em_bf16_fc = em.T.astype(jnp.bfloat16)
    loss_bf16 = jax.block_until_ready(
        invnet_forward(inputs, em_bf16_fc, targets, beta=beta, knn=knn,
                       alpha=alpha, epoch=6, c_tile=128, em_is_fc=True))
    ref_bf16 = _invnet_reference(
        inputs, em.astype(jnp.bfloat16).astype(jnp.float32), targets,
        beta=beta, knn=knn, epoch=6)
    assert np.isfinite(np.asarray(loss_bf16)), "bf16 path produced non-finite loss"
    np.testing.assert_allclose(np.asarray(loss_bf16), np.asarray(ref_bf16),
                               rtol=5e-3, atol=5e-3)

    print("KERNEL_OK")
</pallas_src>

<mosaic_0001>
module attributes {stable_mosaic.version = 11 : i64} {
  func.func @_invnet_kernel(%arg0: i32, %arg1: i32, %arg2: memref<8x64xf32, #tpu.memory_space<vmem>>, %arg3: memref<64x128xf32, #tpu.memory_space<vmem>>, %arg4: memref<8x1xi32, #tpu.memory_space<vmem>>, %arg5: memref<1x8x1xf32, #tpu.memory_space<vmem>>, %arg6: memref<8x64xf32, #tpu.memory_space<vmem>>, %arg7: memref<1x8x1xf32, #tpu.memory_space<vmem>>, %arg8: memref<1x8x1xf32, #tpu.memory_space<vmem>>, %arg9: memref<1x8x1xf32, #tpu.memory_space<vmem>>, %arg10: memref<1x8x128xf32, #tpu.memory_space<vmem>>) attributes {dimension_semantics = [#tpu.dimension_semantics<arbitrary>, #tpu.dimension_semantics<arbitrary>], iteration_bounds = array<i64: 4, 1>, scalar_prefetch = 0 : i64, scratch_operands = 5 : i64, tpu.core_type = #tpu.core_type<tc>, window_params = [{transform_indices = @transform_0, window_bounds = array<i64: 8, 64>}, {transform_indices = @transform_1, window_bounds = array<i64: 64, 128>}, {transform_indices = @transform_2, window_bounds = array<i64: 8, 1>}, {pipeline_mode = #tpu.pipeline_mode<synchronous>, transform_indices = @transform_3, window_bounds = array<i64: 1, 8, 1>}]} {
    %c0_i32 = arith.constant 0 : i32
    %0 = arith.cmpi eq, %arg0, %c0_i32 : i32
    %1 = arith.extui %0 : i1 to i32
    %c0_i32_0 = arith.constant 0 : i32
    %2 = arith.cmpi ne, %1, %c0_i32_0 : i32
    scf.if %2 {
      %c0_38 = arith.constant 0 : index
      %c0_39 = arith.constant 0 : index
      %96 = vector.load %arg2[%c0_38, %c0_39] : memref<8x64xf32, #tpu.memory_space<vmem>>, vector<8x64xf32>
      %cst_40 = arith.constant 2.000000e+01 : f32
      %97 = vector.broadcast %cst_40 : f32 to vector<8x64xf32>
      %98 = arith.mulf %96, %97 : vector<8x64xf32>
      %c0_41 = arith.constant 0 : index
      %c0_42 = arith.constant 0 : index
      %99 = vector.load %arg6[%c0_41, %c0_42] : memref<8x64xf32, #tpu.memory_space<vmem>>, vector<8x64xf32>
      tpu.vector_store %arg6[%c0_41, %c0_42], %98 {strides = array<i32>} : memref<8x64xf32, #tpu.memory_space<vmem>>, vector<8x64xf32>,
      %cst_43 = arith.constant 0xFF800000 : f32
      %100 = vector.broadcast %cst_43 : f32 to vector<8x1xf32>
      %101 = arith.index_cast %arg1 : i32 to index
      %c0_44 = arith.constant 0 : index
      %c0_45 = arith.constant 0 : index
      %102 = vector.load %arg7[%101, %c0_44, %c0_45] : memref<1x8x1xf32, #tpu.memory_space<vmem>>, vector<1x8x1xf32>
      %103 = vector.shape_cast %102 : vector<1x8x1xf32> to vector<8x1xf32>
      %104 = vector.shape_cast %100 : vector<8x1xf32> to vector<1x8x1xf32>
      tpu.vector_store %arg7[%101, %c0_44, %c0_45], %104 {strides = array<i32>} : memref<1x8x1xf32, #tpu.memory_space<vmem>>, vector<1x8x1xf32>,
      %cst_46 = arith.constant 0.000000e+00 : f32
      %105 = vector.broadcast %cst_46 : f32 to vector<8x1xf32>
      %106 = arith.index_cast %arg1 : i32 to index
      %c0_47 = arith.constant 0 : index
      %c0_48 = arith.constant 0 : index
      %107 = vector.load %arg8[%106, %c0_47, %c0_48] : memref<1x8x1xf32, #tpu.memory_space<vmem>>, vector<1x8x1xf32>
      %108 = vector.shape_cast %107 : vector<1x8x1xf32> to vector<8x1xf32>
      %109 = vector.shape_cast %105 : vector<8x1xf32> to vector<1x8x1xf32>
      tpu.vector_store %arg8[%106, %c0_47, %c0_48], %109 {strides = array<i32>} : memref<1x8x1xf32, #tpu.memory_space<vmem>>, vector<1x8x1xf32>,
      %cst_49 = arith.constant 0.000000e+00 : f32
      %110 = vector.broadcast %cst_49 : f32 to vector<8x1xf32>
      %111 = arith.index_cast %arg1 : i32 to index
      %c0_50 = arith.constant 0 : index
      %c0_51 = arith.constant 0 : index
      %112 = vector.load %arg9[%111, %c0_50, %c0_51] : memref<1x8x1xf32, #tpu.memory_space<vmem>>, vector<1x8x1xf32>
      %113 = vector.shape_cast %112 : vector<1x8x1xf32> to vector<8x1xf32>
      %114 = vector.shape_cast %110 : vector<8x1xf32> to vector<1x8x1xf32>
      tpu.vector_store %arg9[%111, %c0_50, %c0_51], %114 {strides = array<i32>} : memref<1x8x1xf32, #tpu.memory_space<vmem>>, vector<1x8x1xf32>,
      %cst_52 = arith.constant 0xFF800000 : f32
      %115 = vector.broadcast %cst_52 : f32 to vector<8x128xf32>
      %116 = arith.index_cast %arg1 : i32 to index
      %c0_53 = arith.constant 0 : index
      %c0_54 = arith.constant 0 : index
      %117 = vector.load %arg10[%116, %c0_53, %c0_54] : memref<1x8x128xf32, #tpu.memory_space<vmem>>, vector<1x8x128xf32>
      %118 = vector.shape_cast %117 : vector<1x8x128xf32> to vector<8x128xf32>
      %119 = vector.shape_cast %115 : vector<8x128xf32> to vector<1x8x128xf32>
      tpu.vector_store %arg10[%116, %c0_53, %c0_54], %119 {strides = array<i32>} : memref<1x8x128xf32, #tpu.memory_space<vmem>>, vector<1x8x128xf32>,
    } else {
    }
    %c0 = arith.constant 0 : index
    %c0_1 = arith.constant 0 : index
    %3 = vector.load %arg6[%c0, %c0_1] : memref<8x64xf32, #tpu.memory_space<vmem>>, vector<8x64xf32>
    %c0_2 = arith.constant 0 : index
    %c0_3 = arith.constant 0 : index
    %4 = vector.load %arg3[%c0_2, %c0_3] : memref<64x128xf32, #tpu.memory_space<vmem>>, vector<64x128xf32>
    %cst = arith.constant dense<0.000000e+00> : vector<8x128xf32>
    %5 = tpu.matmul %3, %4, %cst {dimension_numbers = #tpu.dot_dimension_numbers<[1], [0], [0], [1], [0, 0, 1, 1], [], []>} : vector<8x64xf32>, vector<64x128xf32>, vector<8x128xf32> -> vector<8x128xf32>
    %6 = tpu.iota {dimensions = array<i32: 1>} : vector<8x128xi32>
    %c0_4 = arith.constant 0 : index
    %c0_5 = arith.constant 0 : index
    %7 = vector.load %arg4[%c0_4, %c0_5] : memref<8x1xi32, #tpu.memory_space<vmem>>, vector<8x1xi32>
    %c128_i32 = arith.constant 128 : i32
    %8 = arith.muli %arg0, %c128_i32 : i32
    %9 = vector.broadcast %8 : i32 to vector<8x1xi32>
    %10 = arith.subi %7, %9 : vector<8x1xi32>
    %11 = vector.broadcast %10 : vector<8x1xi32> to vector<8x128xi32>
    %12 = arith.cmpi eq, %6, %11 : vector<8x128xi32>
    %13 = arith.index_cast %arg1 : i32 to index
    %c0_6 = arith.constant 0 : index
    %c0_7 = arith.constant 0 : index
    %14 = vector.load %arg9[%13, %c0_6, %c0_7] : memref<1x8x1xf32, #tpu.memory_space<vmem>>, vector<1x8x1xf32>
    %15 = vector.shape_cast %14 : vector<1x8x1xf32> to vector<8x1xf32>
    %cst_8 = arith.constant 0.000000e+00 : f32
    %16 = vector.broadcast %cst_8 : f32 to vector<8x128xf32>
    %17 = arith.select %12, %5, %16 : vector<8x128xi1>, vector<8x128xf32>
    %cst_9 = arith.constant dense<0.000000e+00> : vector<8xf32>
    %18 = vector.multi_reduction <add>, %17, %cst_9 [1] : vector<8x128xf32> to vector<8xf32>
    %19 = vector.shape_cast %18 : vector<8xf32> to vector<8x1xf32>
    %20 = arith.addf %15, %19 : vector<8x1xf32>
    %21 = arith.index_cast %arg1 : i32 to index
    %c0_10 = arith.constant 0 : index
    %c0_11 = arith.constant 0 : index
    %22 = vector.load %arg9[%21, %c0_10, %c0_11] : memref<1x8x1xf32, #tpu.memory_space<vmem>>, vector<1x8x1xf32>
    %23 = vector.shape_cast %22 : vector<1x8x1xf32> to vector<8x1xf32>
    %24 = vector.shape_cast %20 : vector<8x1xf32> to vector<1x8x1xf32>
    tpu.vector_store %arg9[%21, %c0_10, %c0_11], %24 {strides = array<i32>} : memref<1x8x1xf32, #tpu.memory_space<vmem>>, vector<1x8x1xf32>,
    %25 = arith.index_cast %arg1 : i32 to index
    %c0_12 = arith.constant 0 : index
    %c0_13 = arith.constant 0 : index
    %26 = vector.load %arg7[%25, %c0_12, %c0_13] : memref<1x8x1xf32, #tpu.memory_space<vmem>>, vector<1x8x1xf32>
    %27 = vector.shape_cast %26 : vector<1x8x1xf32> to vector<8x1xf32>
    %cst_14 = arith.constant dense<0xFF800000> : vector<8xf32>
    %28 = vector.multi_reduction <maximumf>, %5, %cst_14 [1] : vector<8x128xf32> to vector<8xf32>
    %29 = vector.shape_cast %28 : vector<8xf32> to vector<8x1xf32>
    %30 = arith.maximumf %27, %29 : vector<8x1xf32>
    %31 = arith.index_cast %arg1 : i32 to index
    %c0_15 = arith.constant 0 : index
    %c0_16 = arith.constant 0 : index
    %32 = vector.load %arg8[%31, %c0_15, %c0_16] : memref<1x8x1xf32, #tpu.memory_space<vmem>>, vector<1x8x1xf32>
    %33 = vector.shape_cast %32 : vector<1x8x1xf32> to vector<8x1xf32>
    %34 = arith.subf %27, %30 : vector<8x1xf32>
    %35 = math.exp %34 : vector<8x1xf32>
    %36 = arith.mulf %33, %35 : vector<8x1xf32>
    %37 = vector.broadcast %30 : vector<8x1xf32> to vector<8x128xf32>
    %38 = arith.subf %5, %37 : vector<8x128xf32>
    %39 = math.exp %38 : vector<8x128xf32>
    %cst_17 = arith.constant dense<0.000000e+00> : vector<8xf32>
    %40 = vector.multi_reduction <add>, %39, %cst_17 [1] : vector<8x128xf32> to vector<8xf32>
    %41 = vector.shape_cast %40 : vector<8xf32> to vector<8x1xf32>
    %42 = arith.addf %36, %41 : vector<8x1xf32>
    %43 = arith.index_cast %arg1 : i32 to index
    %c0_18 = arith.constant 0 : index
    %c0_19 = arith.constant 0 : index
    %44 = vector.load %arg8[%43, %c0_18, %c0_19] : memref<1x8x1xf32, #tpu.memory_space<vmem>>, vector<1x8x1xf32>
    %45 = vector.shape_cast %44 : vector<1x8x1xf32> to vector<8x1xf32>
    %46 = vector.shape_cast %42 : vector<8x1xf32> to vector<1x8x1xf32>
    tpu.vector_store %arg8[%43, %c0_18, %c0_19], %46 {strides = array<i32>} : memref<1x8x1xf32, #tpu.memory_space<vmem>>, vector<1x8x1xf32>,
    %47 = arith.index_cast %arg1 : i32 to index
    %c0_20 = arith.constant 0 : index
    %c0_21 = arith.constant 0 : index
    %48 = vector.load %arg7[%47, %c0_20, %c0_21] : memref<1x8x1xf32, #tpu.memory_space<vmem>>, vector<1x8x1xf32>
    %49 = vector.shape_cast %48 : vector<1x8x1xf32> to vector<8x1xf32>
    %50 = vector.shape_cast %30 : vector<8x1xf32> to vector<1x8x1xf32>
    tpu.vector_store %arg7[%47, %c0_20, %c0_21], %50 {strides = array<i32>} : memref<1x8x1xf32, #tpu.memory_space<vmem>>, vector<1x8x1xf32>,
    %51 = arith.index_cast %arg1 : i32 to index
    %c0_22 = arith.constant 0 : index
    %c0_23 = arith.constant 0 : index
    %52 = vector.load %arg10[%51, %c0_22, %c0_23] : memref<1x8x128xf32, #tpu.memory_space<vmem>>, vector<1x8x128xf32>
    %53 = vector.shape_cast %52 : vector<1x8x128xf32> to vector<8x128xf32>
    %54 = tpu.concatenate %53, %5 in 1 : vector<8x128xf32>, vector<8x128xf32> -> vector<8x256xf32>
    %55 = vector.extract_strided_slice %53 {offsets = [0, 0], sizes = [8, 1], strides = [1, 1]} : vector<8x128xf32> to vector<8x1xf32>
    %56 = arith.maximumf %55, %29 : vector<8x1xf32>
    %57 = vector.broadcast %56 : vector<8x1xf32> to vector<8x256xf32>
    %58 = arith.cmpf oeq, %54, %57 : vector<8x256xf32>
    %cst_24 = arith.constant 0xFF800000 : f32
    %59 = vector.broadcast %cst_24 : f32 to vector<8x256xf32>
    %60 = arith.select %58, %59, %54 : vector<8x256xi1>, vector<8x256xf32>
    %cst_25 = arith.constant dense<0xFF800000> : vector<8xf32>
    %61 = vector.multi_reduction <maximumf>, %60, %cst_25 [1] : vector<8x256xf32> to vector<8xf32>
    %62 = vector.shape_cast %61 : vector<8xf32> to vector<8x1xf32>
    %63 = vector.broadcast %62 : vector<8x1xf32> to vector<8x256xf32>
    %64 = arith.cmpf oeq, %60, %63 : vector<8x256xf32>
    %cst_26 = arith.constant 0xFF800000 : f32
    %65 = vector.broadcast %cst_26 : f32 to vector<8x256xf32>
    %66 = arith.select %64, %65, %60 : vector<8x256xi1>, vector<8x256xf32>
    %cst_27 = arith.constant dense<0xFF800000> : vector<8xf32>
    %67 = vector.multi_reduction <maximumf>, %66, %cst_27 [1] : vector<8x256xf32> to vector<8xf32>
    %68 = vector.shape_cast %67 : vector<8xf32> to vector<8x1xf32>
    %69 = vector.broadcast %68 : vector<8x1xf32> to vector<8x256xf32>
    %70 = arith.cmpf oeq, %66, %69 : vector<8x256xf32>
    %cst_28 = arith.constant 0xFF800000 : f32
    %71 = vector.broadcast %cst_28 : f32 to vector<8x256xf32>
    %72 = arith.select %70, %71, %66 : vector<8x256xi1>, vector<8x256xf32>
    %cst_29 = arith.constant dense<0xFF800000> : vector<8xf32>
    %73 = vector.multi_reduction <maximumf>, %72, %cst_29 [1] : vector<8x256xf32> to vector<8xf32>
    %74 = vector.shape_cast %73 : vector<8xf32> to vector<8x1xf32>
    %75 = vector.broadcast %74 : vector<8x1xf32> to vector<8x256xf32>
    %76 = arith.cmpf oeq, %72, %75 : vector<8x256xf32>
    %cst_30 = arith.constant 0xFF800000 : f32
    %77 = vector.broadcast %cst_30 : f32 to vector<8x256xf32>
    %78 = arith.select %76, %77, %72 : vector<8x256xi1>, vector<8x256xf32>
    %cst_31 = arith.constant dense<0xFF800000> : vector<8xf32>
    %79 = vector.multi_reduction <maximumf>, %78, %cst_31 [1] : vector<8x256xf32> to vector<8xf32>
    %80 = vector.shape_cast %79 : vector<8xf32> to vector<8x1xf32>
    %81 = vector.broadcast %80 : vector<8x1xf32> to vector<8x256xf32>
    %82 = arith.cmpf oeq, %78, %81 : vector<8x256xf32>
    %cst_32 = arith.constant 0xFF800000 : f32
    %83 = vector.broadcast %cst_32 : f32 to vector<8x256xf32>
    %84 = arith.select %82, %83, %78 : vector<8x256xi1>, vector<8x256xf32>
    %cst_33 = arith.constant dense<0xFF800000> : vector<8xf32>
    %85 = vector.multi_reduction <maximumf>, %84, %cst_33 [1] : vector<8x256xf32> to vector<8xf32>
    %86 = vector.shape_cast %85 : vector<8xf32> to vector<8x1xf32>
    %cst_34 = arith.constant 0xFF800000 : f32
    %87 = vector.broadcast %cst_34 : f32 to vector<8x122xf32>
    %88 = tpu.concatenate %56, %62, %68, %74, %80, %86, %87 in 1 : vector<8x1xf32>, vector<8x1xf32>, vector<8x1xf32>, vector<8x1xf32>, vector<8x1xf32>, vector<8x1xf32>, vector<8x122xf32> -> vector<8x128xf32>
    %89 = arith.index_cast %arg1 : i32 to index
    %c0_35 = arith.constant 0 : index
    %c0_36 = arith.constant 0 : index
    %90 = vector.load %arg10[%89, %c0_35, %c0_36] : memref<1x8x128xf32, #tpu.memory_space<vmem>>, vector<1x8x128xf32>
    %91 = vector.shape_cast %90 : vector<1x8x128xf32> to vector<8x128xf32>
    %92 = vector.shape_cast %88 : vector<8x128xf32> to vector<1x8x128xf32>
    tpu.vector_store %arg10[%89, %c0_35, %c0_36], %92 {strides = array<i32>} : memref<1x8x128xf32, #tpu.memory_space<vmem>>, vector<1x8x128xf32>,
    %c3_i32 = arith.constant 3 : i32
    %93 = arith.cmpi eq, %arg0, %c3_i32 : i32
    %94 = arith.extui %93 : i1 to i32
    %c0_i32_37 = arith.constant 0 : i32
    %95 = arith.cmpi ne, %94, %c0_i32_37 : i32
    scf.if %95 {
      %96 = arith.index_cast %arg1 : i32 to index
      %c0_38 = arith.constant 0 : index
      %c0_39 = arith.constant 0 : index
      %97 = vector.load %arg7[%96, %c0_38, %c0_39] : memref<1x8x1xf32, #tpu.memory_space<vmem>>, vector<1x8x1xf32>
      %98 = vector.shape_cast %97 : vector<1x8x1xf32> to vector<8x1xf32>
      %99 = arith.index_cast %arg1 : i32 to index
      %c0_40 = arith.constant 0 : index
      %c0_41 = arith.constant 0 : index
      %100 = vector.load %arg8[%99, %c0_40, %c0_41] : memref<1x8x1xf32, #tpu.memory_space<vmem>>, vector<1x8x1xf32>
      %101 = vector.shape_cast %100 : vector<1x8x1xf32> to vector<8x1xf32>
      %102 = math.log %101 : vector<8x1xf32>
      %103 = arith.addf %98, %102 : vector<8x1xf32>
      %104 = arith.index_cast %arg1 : i32 to index
      %c0_42 = arith.constant 0 : index
      %c0_43 = arith.constant 0 : index
      %105 = vector.load %arg9[%104, %c0_42, %c0_43] : memref<1x8x1xf32, #tpu.memory_space<vmem>>, vector<1x8x1xf32>
      %106 = vector.shape_cast %105 : vector<1x8x1xf32> to vector<8x1xf32>
      %107 = arith.subf %106, %103 : vector<8x1xf32>
      %108 = arith.index_cast %arg1 : i32 to index
      %c0_44 = arith.constant 0 : index
      %c0_45 = arith.constant 0 : index
      %109 = vector.load %arg10[%108, %c0_44, %c0_45] : memref<1x8x128xf32, #tpu.memory_space<vmem>>, vector<1x8x128xf32>
      %110 = vector.shape_cast %109 : vector<1x8x128xf32> to vector<8x128xf32>
      %111 = tpu.iota {dimensions = array<i32: 1>} : vector<8x128xi32>
      %c6_i32 = arith.constant 6 : i32
      %112 = vector.broadcast %c6_i32 : i32 to vector<8x128xi32>
      %113 = arith.cmpi slt, %111, %112 : vector<8x128xi32>
      %cst_46 = arith.constant 0.000000e+00 : f32
      %114 = vector.broadcast %cst_46 : f32 to vector<8x128xf32>
      %115 = arith.select %113, %110, %114 : vector<8x128xi1>, vector<8x128xf32>
      %cst_47 = arith.constant dense<0.000000e+00> : vector<8xf32>
      %116 = vector.multi_reduction <add>, %115, %cst_47 [1] : vector<8x128xf32> to vector<8xf32>
      %117 = vector.shape_cast %116 : vector<8xf32> to vector<8x1xf32>
      %118 = vector.extract_strided_slice %110 {offsets = [0, 5], sizes = [8, 1], strides = [1, 1]} : vector<8x128xf32> to vector<8x1xf32>
      %119 = arith.cmpf oge, %106, %118 : vector<8x1xf32>
      %120 = arith.extui %119 : vector<8x1xi1> to vector<8x1xi32>
      %121 = arith.sitofp %120 : vector<8x1xi32> to vector<8x1xf32>
      %cst_48 = arith.constant 6.000000e+00 : f32
      %122 = vector.broadcast %cst_48 : f32 to vector<8x1xf32>
      %123 = arith.mulf %122, %103 : vector<8x1xf32>
      %124 = arith.subf %117, %123 : vector<8x1xf32>
      %125 = arith.mulf %121, %107 : vector<8x1xf32>
      %126 = arith.subf %124, %125 : vector<8x1xf32>
      %cst_49 = arith.constant 0.166666672 : f32
      %127 = vector.broadcast %cst_49 : f32 to vector<8x1xf32>
      %128 = arith.mulf %126, %127 : vector<8x1xf32>
      %129 = arith.addf %107, %128 : vector<8x1xf32>
      %cst_50 = arith.constant 0.000000e+00 : f32
      %130 = vector.broadcast %cst_50 : f32 to vector<8x1xf32>
      %131 = arith.subf %130, %129 : vector<8x1xf32>
      %132 = arith.index_cast %arg1 : i32 to index
      %c0_51 = arith.constant 0 : index
      %c0_52 = arith.constant 0 : index
      %133 = vector.load %arg5[%132, %c0_51, %c0_52] : memref<1x8x1xf32, #tpu.memory_space<vmem>>, vector<1x8x1xf32>
      %134 = vector.shape_cast %133 : vector<1x8x1xf32> to vector<8x1xf32>
      %135 = vector.shape_cast %131 : vector<8x1xf32> to vector<1x8x1xf32>
      tpu.vector_store %arg5[%132, %c0_51, %c0_52], %135 {strides = array<i32>} : memref<1x8x1xf32, #tpu.memory_space<vmem>>, vector<1x8x1xf32>,
    } else {
    }
    return
  }
  func.func @transform_0(%arg0: i32, %arg1: i32) -> (i32, i32) {
    %c0_i32 = arith.constant 0 : i32
    %c0_i32_0 = arith.constant 0 : i32
    return %arg1, %c0_i32 : i32, i32
  }
  func.func @transform_1(%arg0: i32, %arg1: i32) -> (i32, i32) {
    %c0_i32 = arith.constant 0 : i32
    %c0_i32_0 = arith.constant 0 : i32
    return %c0_i32, %arg0 : i32, i32
  }
  func.func @transform_2(%arg0: i32, %arg1: i32) -> (i32, i32) {
    %c0_i32 = arith.constant 0 : i32
    %c0_i32_0 = arith.constant 0 : i32
    return %arg1, %c0_i32 : i32, i32
  }
  func.func @transform_3(%arg0: i32, %arg1: i32) -> (i32, i32, i32) {
    %c0_i32 = arith.constant 0 : i32
    %c0_i32_0 = arith.constant 0 : i32
    %c0_i32_1 = arith.constant 0 : i32
    %c0_i32_2 = arith.constant 0 : i32
    return %c0_i32, %c0_i32_0, %c0_i32_1 : i32, i32, i32
  }
}

</mosaic_0001>

<bundles_post_ra>
// kernel: tpu_custom_call.1
= control target key start
LH: loop header
LB: loop body
LE: loop exit
PB: predicated region body
PF: predicated region fallthrough
CT: control target
= control target key end

     0   :  { %8 = vsyncpa [#allocation8], 0  ;;  %s900_s0 = inlined_call_operand.vmem [shape: f32[8,64], index: 0, kind: input, shape index: {}]   ;;  %s901_s1 = inlined_call_operand.hbm [shape: f32[64,512], index: 1, kind: input, shape index: {}]   ;;  %s902_s2 = inlined_call_operand.vmem [shape: s32[8,1], index: 2, kind: input, shape index: {}]   ;;  %s903_s3 = inlined_call_operand.vmem [shape: f32[1,8,1], index: 3, kind: output, shape index: {}]  }
   0x1   :  { %10 = vsyncpa [#allocation8 + $0x1], 0  ;;  %s776_s12 = smov 0   ;;  %s778_s13 = smov 0  }
   0x2   :  { %s780_s14 = smov 0   ;;  %s782_s15 = smov 0  }
   0x3   :  { %s784_s16 = smov 0   ;;  %s786_s17 = smov 0  }
   0x4 LB: > { %s548_s18 = sadd.s32 4294967295, %s743_s17   ;;  %s28_s19 = sadd.s32 1, %s739_s16  ;;  %s743_s17 = sphi %s786_s17, %s16_s17   ;;  %s739_s16 = sphi %s784_s16, %s911_s16   ;;  %s735_s15 = sphi %s782_s15, %s910_s15   ;;  %s731_s14 = sphi %s780_s14, %s909_s14   ;;  %s727_s13 = sphi %s778_s13, %s908_s13   ;;  %s723_s12 = sphi %s776_s12, %s907_s12  }
   0x5   : > { %p30_p0 = scmp.ge.s32.totalorder %s28_s19, 4  ;;  %s61_s20 = sadd.s32 1, %s731_s14 }
   0x6   : > { %p68_p1 = scmp.ne.s32.totalorder %s731_s14, %s727_s13  ;;  %p69_p2 = scmp.eq.s32.totalorder %s743_s17, 0 }
   0x7   : > { %s913_s19 = smov (%p30_p0, %s28_s19), 0  ;;  %p74_p4 = scmp.ne.s32.totalorder %s727_s13, %s723_s12 }
   0x8   : > { %p812_p3 = por %p69_p2, %p68_p1  ;;  %s58_s22 = ssub.s32 %s739_s16, %s913_s19 }
   0x9   : > { %p75_p5 = scmp.eq.s32.totalorder %s548_s18, 0  ;;  %p59_p6 = scmp.eq.s32.totalorder %s58_s22, 0 }
   0xa   : > { %p598_p8 = scmp.lt.s32.totalorder %s743_s17, 4  ;;  %s159_s25 = sand.u32 1, %s731_s14  }
   0xb   : > { %p819_p7 = por %p75_p5, %p74_p4  ;;  %s554_s26 = sshll.u32 %s739_s16, 7 }
   0xc   : > { %s825_s24 = scalar_select %p59_p6, %s731_s14, %s61_s20  }
   0xd   : > { %s553_s27 = sshll.u32 %s159_s25, 6  ;;  %s168_s30 = scalar_lea.hbm %s901_s1, %s554_s26 }
   0xe   : > { %s163_s4 = scalar_lea.vmem [#allocation7], %s553_s27  ;;  %p834_p9 = pnand %p598_p8, %p812_p3 }
   0xf   : > { %s169_s5 = sshll.u32 %s163_s4, 4  ;;  %p555_p10 = scmp.ge.s32.totalorder %s743_s17, 1  ;;  %s170_s5 = int_to_ptr.vmem [resolvable:$true] %s169_s5 }
  0x10   : > { %s160_s7 = scalar_lea.sflag [#allocation8], %s159_s25  ;;  %p667_p11 = pneg %p834_p9 }
  0x11   : > { %s678_s8 = scalar_lea.vmem %s170_s5, 1024  ;;  %s745_s9 = smov [#allocation7]  }
  0x12   : > { %p679_p12 = scmp.ne.s32.totalorder %s170_s5, %s678_s8  ;;  %s683_s10 = sshll.u32 %s745_s9, 4  ;;  %s684_s10 = int_to_ptr.vmem [resolvable:$false] %s683_s10 }
  0x13   : > { %s685_s11 = scalar_lea.vmem %s684_s10, 2048  ;;  %p686_p1 = scmp.lt.s32.totalorder %s170_s5, %s684_s10 }
  0x14   : > { %p681_p13 = pnand %p679_p12, %p667_p11  ;;  %p687_p2 = scmp.lt.s32.totalorder %s685_s11, %s678_s8 }
  0x16   : > { %p682_p0 = pneg %p681_p13  ;;  %p688_p3 = por %p687_p2, %p686_p1 }
  0x18   : > { %p689_p4 = pnand %p688_p3, %p682_p0 }
  0x1a   : > { %692 = shalt.err (!%p689_p4)
}
  0x1b   : > { %s746_s12 = smov 512   ;;  %s747_s18 = smov 128  }
  0x1c   : > { %s748_s20 = smov 8   ;;  %p177_p5 = scmp.lt.s32.totalorder %s743_s17, 5 }
  0x1d   : > { %597 = dma.hbm_to_vmem [thread:$0]  (!%p834_p9), %s168_s30, 1024, %s170_s5, %s160_s7, %s746_s12, %s747_s18, %s748_s20  }
  0x1e   : > { %p178_p6 = pnand %p555_p10, %p177_p5 }
  0x1f   : > { %s183_s21 = sand.u32 (!%p178_p6), 1, %s727_s13  }
  0x20   : > { %181 = sbr.rel (%p178_p6) target bundleno = 1399 (0x577), region = 32  ;;  %s556_s22 = sshll.u32 (!%p178_p6), %s183_s21, 6 }
  0x21   : > { %s184_s25 = scalar_lea.sflag (!%p178_p6), [#allocation8], %s183_s21  ;;  %s847_s26 = scalar_lea.vmem (!%p178_p6), [#allocation7], %s556_s22 }
  0x25   : > { %718 = dma.done.wait (%p819_p7), %s184_s25, 1024  }
  0x26   : > { %720 = vsyncadd (%p819_p7), %s184_s25, 4294966272  ;;  %p557_p8 = scmp.ne.s32.totalorder %s735_s15, 0 }
  0x28   : > { %224 = sbr.rel (%p557_p8) target bundleno = 49 (0x31), region = 40 }
  0x2d   : > { %v225_v0 = vld [vmem:[%s900_s0] sm:$0xff]  ;;  %vm227_vm0 = vcmask 523264   ;;  %vm231_vm1 = vcmask 7168   ;;  %v749_v2 = vmov -inf   ;;  %v750_v3 = vmov 0.0  }
  0x2e   : > { %v226_v1 = vmul.f32 20.0, %v225_v0  ;;  %232 = vst.msk [vmem:[#allocation3] sm:$0xff] %vm231_vm1, %v749_v2  ;;  %238 = vst [vmem:[#allocation6] sm:$0xff] %v749_v2 }
  0x2f   : > { %234 = vst.msk [vmem:[#allocation4] sm:$0xff] %vm231_vm1, %v750_v3  ;;  %236 = vst.msk [vmem:[#allocation5] sm:$0xff] %vm231_vm1, %v750_v3 }
  0x30   : > { %228 = vst.msk [vmem:[#allocation2] sm:$0xff] %vm227_vm0, %v226_v1 }
  0x31 PF: > { %v247_v4 = vld [vmem:[%s847_s26 + $0x38] sm:$0xff]  ;;  %v751_v5 = vmov 0.0   ;;  %v246_v6 = vld [vmem:[%s847_s26 + $0x30] sm:$0xff]  ;;  %vm752_vm2 = vmmov 0   ;;  %v245_v7 = vld [vmem:[%s847_s26 + $0x28] sm:$0xff]  ;;  %vm248_vm3 = vcmask 523264   ;;  %v322_v25 = vlaneseq }
  0x32   : > { %573 = vmatprep.subr.mxu0 %v751_v5  ;;  %589 = vmatprep.mubr.msk.f32.mxu0 %vm752_vm2, %v751_v5  ;;  %v244_v8 = vld [vmem:[%s847_s26 + $0x20] sm:$0xff]  ;;  %v243_v9 = vld [vmem:[%s847_s26 + $0x18] sm:$0xff]  ;;  %v242_v10 = vld [vmem:[%s847_s26 + $0x10] sm:$0xff]  ;;  %v753_v16 = vmov 0   ;;  %s559_s23 = sshll.u32 %s735_s15, 7  ;;  %vm339_vm4 = vcmask 7168  }
  0x33   : > { %574 = vmatpush3.msra.mxu0 %v247_v4  ;;  %v241_v11 = vld [vmem:[%s847_s26 + $0x8] sm:$0xff]  ;;  %v240_v12 = vld [vmem:[%s847_s26] sm:$0xff]  ;;  %657 = vset.pattern.permute.xlu0 %v753_v16  ;;  %v324_v20 = vld [vmem:[%s902_s2] sm:$0xff]  ;;  %v326_v21 = vstv %s559_s23  ;;  %v870_v27 = vand.u32 127, %v322_v25  ;;  %vm409_vm14 = vcmask 15360   ;;  %vm411_vm15 = vcmask 23552  }
  0x34   : > { %575 = vmatprep.subr.mxu0 %v751_v5  ;;  %658 = vset.pattern.permute.xlu1 %v753_v16  ;;  %v327_v24 = vsub.s32 %v324_v20, %v326_v21  ;;  %vm413_vm0 = vcmask 31744   ;;  %p560_p7 = scmp.ne.s32.totalorder %s735_s15, 3 }
  0x35   : > { %576 = vmatpush3.msra.mxu0 %v246_v6  ;;  %v342_v17 = vld [vmem:[#allocation3] sm:$0xff]  ;;  %v366_v18 = vld [vmem:[#allocation6] sm:$0xff]  ;;  %s754_s4 = smov (!%p560_p7), 123  }
  0x36   : > { %577 = vmatprep.subr.mxu0 %v751_v5  ;;  %v334_v34 = vld [vmem:[#allocation5] sm:$0xff]  ;;  %v347_v63 = vld [vmem:[#allocation4] sm:$0xff] }
  0x37   : > { %578 = vmatpush3.msra.mxu0 %v245_v7  ;;  %v239_v13 = vld [vmem:[#allocation2] sm:$0xff] }
  0x38   : > { %579 = vmatprep.subr.mxu0 %v751_v5 }
  0x39   : > { %580 = vmatpush3.msra.mxu0 %v244_v8 }
  0x3a   : > { %581 = vmatprep.subr.mxu0 %v751_v5 }
  0x3b   : > { %582 = vmatpush3.msra.mxu0 %v243_v9 }
  0x3c   : > { %583 = vmatprep.subr.mxu0 %v751_v5 }
  0x3d   : > { %584 = vmatpush3.msra.mxu0 %v242_v10 }
  0x3e   : > { %585 = vmatprep.subr.mxu0 %v751_v5 }
  0x3f   : > { %586 = vmatpush3.msra.mxu0 %v241_v11 }
  0x40   : > { %587 = vmatprep.subr.mxu0 %v751_v5 }
  0x41   : > { %588 = vmatpush3.msra.mxu0 %v240_v12 }
  0x42   : > { %590 = vmatmul.mubr.msk.f32.vlgmr.msra.gmra.mxu0 %vm248_vm3, %v239_v13  ;;  %vm415_vm3 = vcmask 39936  }
 0x102   : > { %v318_v14 = vpop.f32.mrf.mxu0 }
 0x103   : > { %343 = vmax.xlane.f32.xlu0 %v318_v14 }
 0x104   : > { %v591_v15 = vpop.f32.mrf.mxu0 }
 0x18c   : > { %v344_v19 = vpop.xlane.xlu0 %343 }
 0x18d   : > { %v345_v22 = vmax.f32 %v342_v17, %v344_v19  ;;  %v367_v23 = vmax.f32 %v366_v18, %v344_v19 }
 0x18f   : > { %364 = vst.msk [vmem:[#allocation3] sm:$0xff] %vm339_vm4, %v345_v22  ;;  %370 = vperm.xlu0 %657, %v367_v23   ;;  %v348_v52 = vsub.f32 %v342_v17, %v345_v22 }
 0x191   : > { %v349_v53 = vmul.f32 1.442695, %v348_v52 }
 0x193   : > { %329 = vperm.xlu0 %657, %v327_v24  }
 0x20a   : > { %v371_v26 = vpop.permute.xlu0 %370 }
 0x20b   : > { %vm373_vm5 = vcmp.eq.f32.partialorder %v366_v18, %v371_v26  ;;  %vm374_vm6 = vcmp.eq.f32.partialorder %v318_v14, %v371_v26 }
 0x20c   : > { %v375_v28 = vsel %vm373_vm5, -inf, %v366_v18  ;;  %v376_v29 = vsel %vm374_vm6, -inf, %v318_v14  ;;  %vm417_vm5 = vcmask 48128  }
 0x20d   : > { %v377_v30 = vmax.f32 %v375_v28, %v376_v29 }
 0x20e   : > { %v330_v31 = vpop.permute.xlu0 %329 }
 0x20f   : > { %vm331_vm7 = vcmp.eq.s32.totalorder %v870_v27, %v330_v31  ;;  %378 = vmax.xlane.f32.xlu1 %v377_v30 }
 0x210   : > { %v335_v32 = vsel %vm331_vm7, %v318_v14, 0.0 }
 0x211   : > { %336 = vadd.xlane.f32.xlu0 %v335_v32 }
 0x298   : > { %v379_v33 = vpop.xlane.xlu1 %378 }
 0x299   : > { %vm380_vm8 = vcmp.eq.f32.partialorder %v375_v28, %v379_v33  ;;  %vm381_vm9 = vcmp.eq.f32.partialorder %v376_v29, %v379_v33  ;;  %v408_v54 = vsel %vm339_vm4, %v367_v23, %v379_v33 }
 0x29a   : > { %v337_v35 = vpop.xlane.xlu0 %336  ;;  %v382_v36 = vsel %vm380_vm8, -inf, %v375_v28  ;;  %v383_v37 = vsel %vm381_vm9, -inf, %v376_v29 }
 0x29b   : > { %v338_v38 = vadd.f32 %v337_v35, %v334_v34  ;;  %v384_v39 = vmax.f32 %v382_v36, %v383_v37 }
 0x29d   : > { %340 = vst.msk [vmem:[#allocation5] sm:$0xff] %vm339_vm4, %v338_v38  ;;  %385 = vmax.xlane.f32.xlu1 %v384_v39 }
 0x326   : > { %v386_v40 = vpop.xlane.xlu1 %385 }
 0x327   : > { %vm387_vm10 = vcmp.eq.f32.partialorder %v382_v36, %v386_v40  ;;  %vm388_vm11 = vcmp.eq.f32.partialorder %v383_v37, %v386_v40  ;;  %v410_v55 = vsel %vm409_vm14, %v408_v54, %v386_v40 }
 0x328   : > { %v389_v41 = vsel %vm387_vm10, -inf, %v382_v36  ;;  %v390_v42 = vsel %vm388_vm11, -inf, %v383_v37 }
 0x329   : > { %v391_v43 = vmax.f32 %v389_v41, %v390_v42 }
 0x32b   : > { %392 = vmax.xlane.f32.xlu1 %v391_v43 }
 0x33c   : > { %354 = vperm.xlu1 %658, %v345_v22  }
 0x3b4   : > { %v393_v44 = vpop.xlane.xlu1 %392 }
 0x3b5   : > { %vm394_vm12 = vcmp.eq.f32.partialorder %v389_v41, %v393_v44  ;;  %vm395_vm13 = vcmp.eq.f32.partialorder %v390_v42, %v393_v44  ;;  %v412_v56 = vsel %vm411_vm15, %v410_v55, %v393_v44 }
 0x3b6   : > { %v396_v45 = vsel %vm394_vm12, -inf, %v389_v41  ;;  %v397_v46 = vsel %vm395_vm13, -inf, %v390_v42 }
 0x3b7   : > { %v398_v47 = vmax.f32 %v396_v45, %v397_v46 }
 0x3b8   : > { %v355_v48 = vpop.permute.xlu1 %354 }
 0x3b9   : > { %v357_v49 = vsub.f32 %v318_v14, %v355_v48  ;;  %399 = vmax.xlane.f32.xlu1 %v398_v47 }
 0x3bb   : > { %v358_v50 = vmul.f32 1.442695, %v357_v49 }
 0x3bd   : > { %659 = vpow2.f32 %v358_v50 }
 0x3be   : > { %661 = vpow2.f32 %v349_v53 }
 0x3ca   : > { %v660_v51 = vpop.eup %659 }
 0x3cb   : > { %360 = vadd.xlane.f32.xlu1 %v660_v51  ;;  %v662_v62 = vpop.eup %661 }
 0x3cc   : > { %v351_v0 = vmul.f32 %v662_v62, %v347_v63 }
 0x442   : > { %v400_v57 = vpop.xlane.xlu1 %399 }
 0x443   : > { %v414_v58 = vsel %vm413_vm0, %v412_v56, %v400_v57  ;;  %vm401_vm1 = vcmp.eq.f32.partialorder %v396_v45, %v400_v57  ;;  %vm402_vm2 = vcmp.eq.f32.partialorder %v397_v46, %v400_v57 }
 0x444   : > { %v403_v59 = vsel %vm401_vm1, -inf, %v396_v45  ;;  %v404_v60 = vsel %vm402_vm2, -inf, %v397_v46 }
 0x445   : > { %v405_v61 = vmax.f32 %v403_v59, %v404_v60 }
 0x447   : > { %406 = vmax.xlane.f32.xlu1 %v405_v61 }
 0x454   : > { %v361_v1 = vpop.xlane.xlu1 %360 }
 0x455   : > { %v362_v2 = vadd.f32 %v361_v1, %v351_v0 }
 0x457   : > { %363 = vst.msk [vmem:[#allocation4] sm:$0xff] %vm339_vm4, %v362_v2 }
 0x4cf   : > { %423 = sbr.rel (%p560_p7) target bundleno = 1399 (0x577), region = 44 }
 0x4d0   : > { %v407_v3 = vpop.xlane.xlu1 %406 }
 0x4d1   : > { %v416_v4 = vsel %vm415_vm3, %v414_v58, %v407_v3 }
 0x4d2   : > { %v418_v5 = vsel %vm417_vm5, %v416_v4, -inf }
 0x4d3   : > { %419 = vst [vmem:[#allocation6] sm:$0xff] %v418_v5 }
 0x4d4   : > { %vm432_vm6 = vcmp.lt.s32.totalorder %v870_v27, 6  ;;  %v425_v8 = vld [vmem:[#allocation4] sm:$0xff]  ;;  %v424_v11 = vld [vmem:[#allocation3] sm:$0xff]  ;;  %v429_v14 = vld [vmem:[#allocation5] sm:$0xff]  ;;  %v755_v18 = vmov 0.0  }
 0x4d5   : > { %663 = vlog2.f32 %v425_v8 }
 0x4da   : > { %v431_v6 = vld [vmem:[#allocation6] sm:$0xff] }
 0x4db   : > { %v433_v7 = vsel %vm432_vm6, %v431_v6, 0.0 }
 0x4dc   : > { %434 = vadd.xlane.f32.xlu0 %v433_v7 }
 0x4e2   : > { %v664_v9 = vpop.eup %663 }
 0x4e3   : > { %v427_v10 = vmul.f32 0.6931472, %v664_v9 }
 0x4e5   : > { %v428_v12 = vadd.f32 %v427_v10, %v424_v11 }
 0x4e7   : > { %v443_v15 = vmul.f32 6.0, %v428_v12  ;;  %v430_v16 = vsub.f32 %v429_v14, %v428_v12 }
 0x4f2   : > { %437 = vrot.lane.b32.xlu0 %v431_v6, %s754_s4 }
 0x565   : > { %v435_v13 = vpop.xlane.xlu0 %434 }
 0x566   : > { %v444_v20 = vsub.f32 %v435_v13, %v443_v15 }
 0x569   : > { %v438_v17 = vpop.permute.xlu0 %437 }
 0x56a   : > { %vm440_vm7 = vcmp.ge.f32.partialorder %v429_v14, %v438_v17 }
 0x56b   : > { %v561_v19 = vsel %vm440_vm7, 1.0, %v755_v18 }
 0x56c   : > { %v445_v21 = vmul.f32 %v561_v19, %v430_v16 }
 0x56e   : > { %v446_v22 = vsub.f32 %v444_v20, %v445_v21 }
 0x570   : > { %v447_v23 = vmul.f32 0.16666667, %v446_v22 }
 0x572   : > { %v448_v24 = vadd.f32 %v447_v23, %v430_v16 }
 0x574   : > { %v449_v25 = vsub.f32 0.0, %v448_v24 }
 0x576   : > { %451 = vst.msk [vmem:[%s903_s3] sm:$0xff] %vm339_vm4, %v449_v25 }
 0x577 PF: > { %s16_s17 = sadd.s32 1, %s743_s17   ;;  %s907_s12 = smov %s727_s13 }
 0x578   : > { %p13_p9 = scmp.ge.s32.totalorder %s16_s17, 6   ;;  %s908_s13 = smov %s731_s14 }
 0x579   : > { %s909_s14 = smov %s825_s24  ;;  %s910_s15 = smov %s739_s16 }
 0x57a   : > { %s911_s16 = smov %s913_s19  ;;  %15 = sbr.rel (!%p13_p9) target bundleno = 4 (0x4), region = 91 }
 0x57f   :  { %463 = vsyncpa [#allocation8], 1 }
 0x580   :  { %465 = vsyncpa [#allocation8 + $0x1], 1 }

</bundles_post_ra>
